<compile_context>
chip_gen: v5e
topology: v5e:2x2
jax: 0.10.0
libtpu: 0.0.40
codegen_flags: <defaults>
</compile_context>

<pallas_src>
from collections import OrderedDict

import jax
import jax.numpy as jnp
from jax.experimental import pallas as pl
from jax.experimental.pallas import tpu as pltpu


# -----------------------------------------------------------------------------
# Kernel 1: fused body (1x1 conv + ReLU) and transformer vf-head (1x1 conv).
#   featT = relu(Wb @ imgT + bb)     -> emitted in bf16 (halves HBM writeback)
#   vfT   = Wv @ featT + bv          -> f32 logits
# Channel-major: imgT (Cin, Npix), featT (Cf, Npix), vfT (3, Npix).
# -----------------------------------------------------------------------------
def _body_vf_kernel(x_ref, wb_ref, bb_ref, wv_ref, bv_ref, feat_ref, vf_ref):
    h = jnp.dot(wb_ref[...], x_ref[...], preferred_element_type=jnp.float32)
    h = jnp.maximum(h + bb_ref[...], 0.0)
    feat_ref[...] = h.astype(feat_ref.dtype)
    v = jnp.dot(wv_ref[...], h, preferred_element_type=jnp.float32) + bv_ref[...]
    vf_ref[...] = v.astype(vf_ref.dtype)


def body_vf(img_cm, wb, bb, wv, bv, *, tile_n=512):
    cin, npix = img_cm.shape
    cfeat = wb.shape[0]
    nvf = wv.shape[0]
    tn = min(tile_n, npix)
    assert npix % tn == 0 and tn % 128 == 0, (npix, tn)
    return pl.pallas_call(
        _body_vf_kernel,
        out_shape=(
            jax.ShapeDtypeStruct((cfeat, npix), jnp.bfloat16),
            jax.ShapeDtypeStruct((nvf, npix), jnp.float32),
        ),
        grid_spec=pltpu.PrefetchScalarGridSpec(
            num_scalar_prefetch=0,
            grid=(npix // tn,),
            in_specs=[
                pl.BlockSpec((cin, tn), lambda j: (0, j)),
                pl.BlockSpec((cfeat, cin), lambda j: (0, 0)),
                pl.BlockSpec((cfeat, 1), lambda j: (0, 0)),
                pl.BlockSpec((nvf, cfeat), lambda j: (0, 0)),
                pl.BlockSpec((nvf, 1), lambda j: (0, 0)),
            ],
            out_specs=[
                pl.BlockSpec((cfeat, tn), lambda j: (0, j)),
                pl.BlockSpec((nvf, tn), lambda j: (0, j)),
            ],
        ),
        compiler_params=pltpu.CompilerParams(dimension_semantics=("parallel",)),
    )(img_cm, wb, bb, wv, bv)


# -----------------------------------------------------------------------------
# Kernel 2: front-view -> BEV spatial transform, modulated by calib scale.
#   bevT[b] = calib_scale[b] * (featT[b] @ T^T)
# bf16 MXU operands, f32 VMEM accumulator, reduction over front pixels (K)
# tiled as the innermost ("arbitrary") grid axis; batch axis is "parallel"
# (megacore-shardable).  calib_scale is a tiny untiled SMEM input.
# -----------------------------------------------------------------------------
def _bev_transform_kernel(scale_ref, x_ref, t_ref, o_ref, acc_ref):
    # All grid ids and scalar loads hoisted out of pl.when bodies.
    b = pl.program_id(0)
    k = pl.program_id(1)
    last_k = pl.num_programs(1) - 1
    s = scale_ref[b]  # cheap per-iteration SMEM scalar load

    @pl.when(k == 0)
    def _():
        acc_ref[...] = jnp.zeros_like(acc_ref)

    acc_ref[...] += jnp.dot(x_ref[...], t_ref[...],
                            preferred_element_type=jnp.float32)

    @pl.when(k == last_k)
    def _():
        o_ref[...] = (acc_ref[...] * s).astype(o_ref.dtype)


def bev_transform(featT, t_mat_t, calib_scale, *, batch, tile_k=512):
    cfeat, total_cols = featT.shape
    f_hw = total_cols // batch
    assert total_cols == batch * f_hw
    bev_hw = t_mat_t.shape[1]
    tk = min(tile_k, f_hw)
    assert f_hw % tk == 0, (f_hw, tk)
    k_steps = f_hw // tk
    return pl.pallas_call(
        _bev_transform_kernel,
        out_shape=jax.ShapeDtypeStruct((batch, cfeat, bev_hw), jnp.bfloat16),
        grid_spec=pltpu.PrefetchScalarGridSpec(
            num_scalar_prefetch=0,
            grid=(batch, k_steps),
            in_specs=[
                pl.BlockSpec(memory_space=pltpu.MemorySpace.SMEM),   # calib_scale (B,)
                pl.BlockSpec((cfeat, tk), lambda b, k: (0, b * k_steps + k)),
                pl.BlockSpec((tk, bev_hw), lambda b, k: (k, 0)),
            ],
            out_specs=pl.BlockSpec((None, cfeat, bev_hw), lambda b, k: (b, 0, 0)),
            scratch_shapes=[pltpu.VMEM((cfeat, bev_hw), jnp.float32)],
        ),
        compiler_params=pltpu.CompilerParams(
            dimension_semantics=("parallel", "arbitrary"),
            vmem_limit_bytes=32 * 1024 * 1024),
    )(calib_scale, featT.astype(jnp.bfloat16), t_mat_t.astype(jnp.bfloat16))


# -----------------------------------------------------------------------------
# Kernel 3: fused BEV heads — v-region (1ch) + f-region (1ch) + semantic head
# (ncls) as a single (2+ncls, Cf) matmul, plus in-kernel channel argmax.
# Outputs are lane-dense: logitsT (2+ncls, P) and predT (1, P).
# -----------------------------------------------------------------------------
def _bev_heads_kernel(x_ref, w_ref, b_ref, logit_ref, pred_ref):
    w = w_ref[...].astype(x_ref.dtype)               # bf16 MXU operands
    y = jnp.dot(w, x_ref[...], preferred_element_type=jnp.float32) + b_ref[...]
    logit_ref[...] = y.astype(logit_ref.dtype)
    # rows 0,1 -> v/f region logits; rows 2.. -> semantic classes.
    nheads = y.shape[0]
    row = jax.lax.broadcasted_iota(jnp.int32, y.shape, 0)
    sem = jnp.where(row >= 2, y, -jnp.inf)
    maxv = jnp.max(sem, axis=0, keepdims=True)
    cand = jnp.where((sem == maxv) & (row >= 2), row - 2, jnp.int32(nheads))
    pred_ref[...] = jnp.min(cand, axis=0, keepdims=True).astype(jnp.int32)


def bev_heads(bev_cm, w_all, b_all, *, tile_p=512):
    cfeat, P = bev_cm.shape
    nheads = w_all.shape[0]
    tp = min(tile_p, P)
    assert P % tp == 0 and tp % 128 == 0, (P, tp)
    return pl.pallas_call(
        _bev_heads_kernel,
        out_shape=(
            jax.ShapeDtypeStruct((nheads, P), jnp.float32),
            jax.ShapeDtypeStruct((1, P), jnp.int32),
        ),
        grid_spec=pltpu.PrefetchScalarGridSpec(
            num_scalar_prefetch=0,
            grid=(P // tp,),
            in_specs=[
                pl.BlockSpec((cfeat, tp), lambda j: (0, j)),
                pl.BlockSpec((nheads, cfeat), lambda j: (0, 0)),
                pl.BlockSpec((nheads, 1), lambda j: (0, 0)),
            ],
            out_specs=[
                pl.BlockSpec((nheads, tp), lambda j: (0, j)),
                pl.BlockSpec((1, tp), lambda j: (0, j)),
            ],
        ),
        compiler_params=pltpu.CompilerParams(dimension_semantics=("parallel",)),
    )(bev_cm, w_all, b_all)


# -----------------------------------------------------------------------------
# Deterministic synthetic parameters (stand-ins for body / transformer / heads)
# Weights are stored in kernel orientation: (out_channels, in_channels).
# -----------------------------------------------------------------------------
def init_params(key, *, cin=3, cfeat=128, num_classes=10,
                front_hw=(16, 16), bev_hw=(8, 8)):
    ks = jax.random.split(key, 8)
    fH, fW = front_hw
    bH, bW = bev_hw
    return {
        # body: pointwise projection + ReLU (synthetic backbone)
        "body_w": 0.1 * jax.random.normal(ks[0], (cfeat, cin), jnp.float32),
        "body_b": jnp.zeros((cfeat, 1), jnp.float32),
        # transformer: vertical/flat/ambiguous logits on front features
        "vf_w": 0.1 * jax.random.normal(ks[1], (3, cfeat), jnp.float32),
        "vf_b": jnp.zeros((3, 1), jnp.float32),
        # transformer: learned front->BEV spatial mixing matrix, stored
        # transposed (front_hw, bev_hw) for the channel-major matmul.
        "bev_Tt": jax.random.normal(ks[2], (fH * fW, bH * bW), jnp.float32)
        / jnp.sqrt(float(fH * fW)),
        # transformer: BEV region logits
        "vreg_w": 0.1 * jax.random.normal(ks[3], (1, cfeat), jnp.float32),
        "vreg_b": jnp.zeros((1, 1), jnp.float32),
        "freg_w": 0.1 * jax.random.normal(ks[4], (1, cfeat), jnp.float32),
        "freg_b": jnp.zeros((1, 1), jnp.float32),
        # semantic head
        "sem_w": 0.1 * jax.random.normal(ks[5], (num_classes, cfeat), jnp.float32),
        "sem_b": jnp.zeros((num_classes, 1), jnp.float32),
        "bev_hw": bev_hw,
    }


# -----------------------------------------------------------------------------
# Forward (do_prediction=True branch of PanopticBevNet.forward)
# -----------------------------------------------------------------------------
def panoptic_bev_forward(params, img, calib, do_prediction=True):
    """img: (B, C, H, W) float32 NCHW, calib: (B, 3, 3) float32."""
    result = OrderedDict()
    loss = OrderedDict()
    stats = OrderedDict()

    # TODO(synk): pad_packed_images / PackedSequence handling — inputs here are
    # already dense, so padding is the identity.
    B, C, H, W = img.shape
    npix = B * H * W
    # channel-major layout: pixels on the 128-lane axis everywhere.
    img_cm = jnp.transpose(img, (1, 0, 2, 3)).reshape(C, npix)

    # ---- body(img) fused with the transformer's vf head ----
    featT, vfT = body_vf(img_cm, params["body_w"], params["body_b"],
                         params["vf_w"], params["vf_b"])
    cfeat = featT.shape[0]
    # ms_feat mirrors the original orchestration (NCHW); the BEV transform
    # consumes featT (channel-major, bf16) directly.
    ms_feat = [jnp.transpose(featT.reshape(cfeat, B, H, W),
                             (1, 0, 2, 3)).astype(jnp.float32)]
    vf_logits_list = [jnp.transpose(vfT.reshape(3, B, H, W), (1, 0, 2, 3))]

    # ---- transformer: front-view -> BEV spatial transform (calib-modulated) ----
    calib_scale = (calib[:, 0, 0]
                   / jnp.maximum(calib[:, 1, 1], 1e-6)).astype(jnp.float32)
    bH, bW = params["bev_hw"]
    bevT = bev_transform(featT, params["bev_Tt"], calib_scale, batch=B)
    ms_bev = [bevT.reshape(B, cfeat, bH, bW).astype(jnp.float32)]

    # ---- fused BEV heads: v-region + f-region + semantic head (+ argmax) ----
    bev_cm = jnp.transpose(bevT, (1, 0, 2)).reshape(cfeat, B * bH * bW)
    w_all = jnp.concatenate(
        [params["vreg_w"], params["freg_w"], params["sem_w"]], axis=0)
    b_all = jnp.concatenate(
        [params["vreg_b"], params["freg_b"], params["sem_b"]], axis=0)
    ncls = params["sem_w"].shape[0]
    logitsT, predT = bev_heads(bev_cm, w_all, b_all)

    v_region_logits_list = [logitsT[0].reshape(B, bH, bW)[:, None]]
    f_region_logits_list = [logitsT[1].reshape(B, bH, bW)[:, None]]

    # do_prediction branch: transformer losses are None
    vf_loss, v_region_loss, f_region_loss = None, None, None

    # ---- sem_algo.inference(sem_head, ms_bev, ...) ----
    if do_prediction:
        sem_logits = jnp.transpose(
            logitsT[2:].reshape(ncls, B, bH, bW), (1, 0, 2, 3))
        sem_pred = predT[0].reshape(B, bH, bW)
        sem_loss, sem_conf_mat = None, None
    else:
        sem_pred, sem_logits, sem_loss, sem_conf_mat = None, None, None, None

    # TODO(synk): det_head / det_decoder (CenterNet decode + NMS) and all
    # training-time loss algos are host-side / injected modules with no clean
    # Pallas equivalent in the prediction path exercised here.

    loss["sem_loss"] = sem_loss
    loss["vf_loss"] = vf_loss
    loss["v_region_loss"] = v_region_loss
    loss["f_region_loss"] = f_region_loss
    result["sem_pred"] = sem_pred
    result["sem_logits"] = sem_logits
    result["vf_logits"] = vf_logits_list
    result["v_region_logits"] = v_region_logits_list
    result["f_region_logits"] = f_region_logits_list
    stats["sem_conf"] = sem_conf_mat
    return loss, result, stats


if __name__ == "__main__":
    key = jax.random.PRNGKey(0)
    k_img, k_calib, k_par = jax.random.split(key, 3)

    B, C, H, W = 2, 3, 16, 16
    img = jax.random.normal(k_img, (B, C, H, W), jnp.float32)
    calib = (jnp.tile(jnp.eye(3, dtype=jnp.float32)[None], (B, 1, 1))
             + 0.01 * jax.random.normal(k_calib, (B, 3, 3), jnp.float32))

    params = init_params(k_par, cin=C, cfeat=128, num_classes=10,
                         front_hw=(H, W), bev_hw=(8, 8))

    loss, result, stats = panoptic_bev_forward(params, img, calib,
                                               do_prediction=True)

    jax.block_until_ready(result["sem_logits"])
    jax.block_until_ready(result["sem_pred"])
    jax.block_until_ready(result["vf_logits"][0])
    jax.block_until_ready(result["v_region_logits"][0])
    jax.block_until_ready(result["f_region_logits"][0])

    assert result["sem_logits"].shape == (B, 10, 8, 8)
    assert result["sem_pred"].shape == (B, 8, 8)
    assert result["sem_pred"].dtype == jnp.int32
    assert result["vf_logits"][0].shape == (B, 3, H, W)
    assert result["v_region_logits"][0].shape == (B, 1, 8, 8)
    assert result["f_region_logits"][0].shape == (B, 1, 8, 8)
    print("KERNEL_OK")
</pallas_src>

<mosaic_0001>
module attributes {stable_mosaic.version = 11 : i64} {
  func.func @_body_vf_kernel(%arg0: i32, %arg1: memref<3x512xf32, #tpu.memory_space<vmem>>, %arg2: memref<128x3xf32, #tpu.memory_space<vmem>>, %arg3: memref<128x1xf32, #tpu.memory_space<vmem>>, %arg4: memref<3x128xf32, #tpu.memory_space<vmem>>, %arg5: memref<3x1xf32, #tpu.memory_space<vmem>>, %arg6: memref<128x512xbf16, #tpu.memory_space<vmem>>, %arg7: memref<3x512xf32, #tpu.memory_space<vmem>>) attributes {dimension_semantics = [#tpu.dimension_semantics<parallel>], iteration_bounds = array<i64: 1>, scalar_prefetch = 0 : i64, scratch_operands = 0 : i64, tpu.core_type = #tpu.core_type<tc>, window_params = [{transform_indices = @transform_0, window_bounds = array<i64: 3, 512>}, {pipeline_mode = #tpu.pipeline_mode<synchronous>, transform_indices = @transform_1, window_bounds = array<i64: 128, 3>}, {pipeline_mode = #tpu.pipeline_mode<synchronous>, transform_indices = @transform_2, window_bounds = array<i64: 128, 1>}, {pipeline_mode = #tpu.pipeline_mode<synchronous>, transform_indices = @transform_3, window_bounds = array<i64: 3, 128>}, {pipeline_mode = #tpu.pipeline_mode<synchronous>, transform_indices = @transform_4, window_bounds = array<i64: 3, 1>}, {transform_indices = @transform_5, window_bounds = array<i64: 128, 512>}, {transform_indices = @transform_6, window_bounds = array<i64: 3, 512>}]} {
    %c0 = arith.constant 0 : index
    %c0_0 = arith.constant 0 : index
    %0 = vector.load %arg2[%c0, %c0_0] : memref<128x3xf32, #tpu.memory_space<vmem>>, vector<128x3xf32>
    %c0_1 = arith.constant 0 : index
    %c0_2 = arith.constant 0 : index
    %1 = vector.load %arg1[%c0_1, %c0_2] : memref<3x512xf32, #tpu.memory_space<vmem>>, vector<3x512xf32>
    %cst = arith.constant dense<0.000000e+00> : vector<128x512xf32>
    %2 = tpu.matmul %0, %1, %cst {dimension_numbers = #tpu.dot_dimension_numbers<[1], [0], [0], [1], [0, 0, 1, 1], [], []>} : vector<128x3xf32>, vector<3x512xf32>, vector<128x512xf32> -> vector<128x512xf32>
    %c0_3 = arith.constant 0 : index
    %c0_4 = arith.constant 0 : index
    %3 = vector.load %arg3[%c0_3, %c0_4] : memref<128x1xf32, #tpu.memory_space<vmem>>, vector<128x1xf32>
    %4 = vector.broadcast %3 : vector<128x1xf32> to vector<128x512xf32>
    %5 = arith.addf %2, %4 : vector<128x512xf32>
    %cst_5 = arith.constant 0.000000e+00 : f32
    %6 = vector.broadcast %cst_5 : f32 to vector<128x512xf32>
    %7 = arith.maximumf %5, %6 : vector<128x512xf32>
    %8 = arith.truncf %7 : vector<128x512xf32> to vector<128x512xbf16>
    %c0_6 = arith.constant 0 : index
    %c0_7 = arith.constant 0 : index
    %9 = vector.load %arg6[%c0_6, %c0_7] : memref<128x512xbf16, #tpu.memory_space<vmem>>, vector<128x512xbf16>
    tpu.vector_store %arg6[%c0_6, %c0_7], %8 {strides = array<i32>} : memref<128x512xbf16, #tpu.memory_space<vmem>>, vector<128x512xbf16>,
    %c0_8 = arith.constant 0 : index
    %c0_9 = arith.constant 0 : index
    %10 = vector.load %arg4[%c0_8, %c0_9] : memref<3x128xf32, #tpu.memory_space<vmem>>, vector<3x128xf32>
    %cst_10 = arith.constant dense<0.000000e+00> : vector<3x512xf32>
    %11 = tpu.matmul %10, %7, %cst_10 {dimension_numbers = #tpu.dot_dimension_numbers<[1], [0], [0], [1], [0, 0, 1, 1], [], []>} : vector<3x128xf32>, vector<128x512xf32>, vector<3x512xf32> -> vector<3x512xf32>
    %c0_11 = arith.constant 0 : index
    %c0_12 = arith.constant 0 : index
    %12 = vector.load %arg5[%c0_11, %c0_12] : memref<3x1xf32, #tpu.memory_space<vmem>>, vector<3x1xf32>
    %13 = vector.broadcast %12 : vector<3x1xf32> to vector<3x512xf32>
    %14 = arith.addf %11, %13 : vector<3x512xf32>
    %c0_13 = arith.constant 0 : index
    %c0_14 = arith.constant 0 : index
    %15 = vector.load %arg7[%c0_13, %c0_14] : memref<3x512xf32, #tpu.memory_space<vmem>>, vector<3x512xf32>
    tpu.vector_store %arg7[%c0_13, %c0_14], %14 {strides = array<i32>} : memref<3x512xf32, #tpu.memory_space<vmem>>, vector<3x512xf32>,
    return
  }
  func.func @transform_0(%arg0: i32) -> (i32, i32) {
    %c0_i32 = arith.constant 0 : i32
    %c0_i32_0 = arith.constant 0 : i32
    return %c0_i32, %arg0 : i32, i32
  }
  func.func @transform_1(%arg0: i32) -> (i32, i32) {
    %c0_i32 = arith.constant 0 : i32
    %c0_i32_0 = arith.constant 0 : i32
    %c0_i32_1 = arith.constant 0 : i32
    return %c0_i32, %c0_i32_0 : i32, i32
  }
  func.func @transform_2(%arg0: i32) -> (i32, i32) {
    %c0_i32 = arith.constant 0 : i32
    %c0_i32_0 = arith.constant 0 : i32
    %c0_i32_1 = arith.constant 0 : i32
    return %c0_i32, %c0_i32_0 : i32, i32
  }
  func.func @transform_3(%arg0: i32) -> (i32, i32) {
    %c0_i32 = arith.constant 0 : i32
    %c0_i32_0 = arith.constant 0 : i32
    %c0_i32_1 = arith.constant 0 : i32
    return %c0_i32, %c0_i32_0 : i32, i32
  }
  func.func @transform_4(%arg0: i32) -> (i32, i32) {
    %c0_i32 = arith.constant 0 : i32
    %c0_i32_0 = arith.constant 0 : i32
    %c0_i32_1 = arith.constant 0 : i32
    return %c0_i32, %c0_i32_0 : i32, i32
  }
  func.func @transform_5(%arg0: i32) -> (i32, i32) {
    %c0_i32 = arith.constant 0 : i32
    %c0_i32_0 = arith.constant 0 : i32
    return %c0_i32, %arg0 : i32, i32
  }
  func.func @transform_6(%arg0: i32) -> (i32, i32) {
    %c0_i32 = arith.constant 0 : i32
    %c0_i32_0 = arith.constant 0 : i32
    return %c0_i32, %arg0 : i32, i32
  }
}

</mosaic_0001>

<bundles_post_ra>
// kernel: tpu_custom_call.1
= control target key start
LH: loop header
LB: loop body
LE: loop exit
PB: predicated region body
PF: predicated region fallthrough
CT: control target
= control target key end

     0   :  { %12 = vsyncpa [#allocation3], 0  ;;  %v855_v2 = vmov 0   ;;  %vm196_vm0 = vcmask 1042432   ;;  %s1509_s0 = inlined_call_operand.vmem [shape: f32[3,512], index: 0, kind: input, shape index: {}]   ;;  %s1510_s1 = inlined_call_operand.vmem [shape: f32[128,3], index: 1, kind: input, shape index: {}]   ;;  %s1511_s2 = inlined_call_operand.vmem [shape: f32[128,1], index: 2, kind: input, shape index: {}]   ;;  %s1512_s3 = inlined_call_operand.vmem [shape: f32[3,128], index: 3, kind: input, shape index: {}]   ;;  %s1513_s4 = inlined_call_operand.vmem [shape: f32[3,1], index: 4, kind: input, shape index: {}]   ;;  %s1514_s5 = inlined_call_operand.hbm [shape: bf16[128,512], index: 5, kind: output, shape index: {0}]   ;;  %s1515_s6 = inlined_call_operand.hbm [shape: f32[3,512], index: 6, kind: output, shape index: {1}]  }
   0x1   :  { %v57_v0 = vld [vmem:[%s1511_s2 + $0x78] sm:$0xff]  ;;  %v40_v1 = vld [vmem:[%s1509_s0] sm:$0x77]  ;;  %800 = vset.pattern.permute.xlu0 %v855_v2  ;;  %v41_v3 = vld [vmem:[%s1509_s0 + $0x8] sm:$0x77]  ;;  %801 = vset.pattern.permute.xlu1 %v855_v2 }
   0x2   :  { %140 = vst [vmem:[#allocation1] ss:$2 sm:$0xff] %v40_v1  ;;  %135 = vperm.xlu0 %800, %v57_v0   ;;  %v55_v4 = vld [vmem:[%s1511_s2 + $0x68] sm:$0xff]  ;;  %802 = vset.pattern.permute.xlu2 %v855_v2  ;;  %v53_v5 = vld [vmem:[%s1511_s2 + $0x58] sm:$0xff] }
   0x3   :  { %142 = vst [vmem:[#allocation1 + $0x10] ss:$2 sm:$0xff] %v41_v3  ;;  %125 = vperm.xlu1 %801, %v55_v4   ;;  %115 = vperm.xlu2 %802, %v53_v5  }
   0x4   :  { %13 = vsyncpa [#allocation5], 0  ;;  %v56_v6 = vld [vmem:[%s1511_s2 + $0x70] sm:$0xff]  ;;  %v24_v7 = vld [vmem:[%s1510_s1] sm:$0xff]  ;;  %vm147_vm1 = vcmask 23552   ;;  %s699_s18 = sshll.u32 %s1514_s5, 4  ;;  %s700_s18 = int_to_ptr.hbm [resolvable:$true] %s699_s18 }
   0x5   :  { %v54_v12 = vld [vmem:[%s1511_s2 + $0x60] sm:$0xff]  ;;  %v52_v13 = vld [vmem:[%s1511_s2 + $0x50] sm:$0xff]  ;;  %v51_v14 = vld [vmem:[%s1511_s2 + $0x48] sm:$0xff]  ;;  %s858_s19 = smov 16   ;;  %vm686_vm2 = vcmask 1043456   ;;  %s859_s20 = smov [#allocation4]  }
   0x6   :  { %v25_v15 = vld [vmem:[%s1510_s1 + $0x8] sm:$0xff]  ;;  %v50_v16 = vld [vmem:[%s1511_s2 + $0x40] sm:$0xff]  ;;  %v49_v17 = vld [vmem:[%s1511_s2 + $0x38] sm:$0xff]  ;;  %s711_s21 = sshll.u32 %s859_s20, 4  ;;  %s713_s23 = sshll.u32 %s1515_s6, 4  ;;  %s712_s21 = int_to_ptr.vmem [resolvable:$true] %s711_s21  ;;  %s714_s23 = int_to_ptr.hbm [resolvable:$true] %s713_s23 }
   0x7   :  { %v48_v18 = vld [vmem:[%s1511_s2 + $0x30] sm:$0xff]  ;;  %v47_v20 = vld [vmem:[%s1511_s2 + $0x28] sm:$0xff]  ;;  %v46_v21 = vld [vmem:[%s1511_s2 + $0x20] sm:$0xff] }
   0x8   :  { %v26_v19 = vld [vmem:[%s1510_s1 + $0x10] sm:$0xff]  ;;  %v45_v22 = vld [vmem:[%s1511_s2 + $0x18] sm:$0xff]  ;;  %v43_v25 = vld [vmem:[%s1511_s2 + $0x8] sm:$0xff] }
   0x9   :  { %v143_v8 = vld.sshfl [vmem:[#allocation1] sm:$0xff pattern:$0x75316420]  ;;  %v144_v9 = vld.sshfl [vmem:[#allocation1 + $0x8] sm:$0xff pattern:$0x75316420] }
   0xa   :  { %727 = vmatpush.msk.msra.mxu0 %vm196_vm0, %v143_v8  ;;  %744 = vmatpush.msk.msra.mxu1 %vm196_vm0, %v144_v9  ;;  %v145_v10 = vld.sshfl [vmem:[#allocation1 + $0x10] sm:$0xff pattern:$0x75316420]  ;;  %v146_v11 = vld.sshfl [vmem:[#allocation1 + $0x18] sm:$0xff pattern:$0x75316420] }
   0xb   :  { %761 = vmatpush.msk.msra.mxu2 %vm196_vm0, %v145_v10  ;;  %778 = vmatpush.msk.msra.mxu3 %vm196_vm0, %v146_v11  ;;  %v27_v23 = vld [vmem:[%s1510_s1 + $0x18] sm:$0xff]  ;;  %v44_v24 = vld [vmem:[%s1511_s2 + $0x10] sm:$0xff]  ;;  %v42_v26 = vld [vmem:[%s1511_s2] sm:$0xff]  ;;  %s857_s2 = smov 256  }
   0xc   :  { %130 = vperm.xlu0 %800, %v56_v6   ;;  %728 = vmatmul.msk.f32.vlgmr.msra.gmra.mxu0 %vm147_vm1, %v24_v7  ;;  %v28_v27 = vld [vmem:[%s1510_s1 + $0x20] sm:$0xff]  ;;  %v29_v28 = vld [vmem:[%s1510_s1 + $0x28] sm:$0xff]  ;;  %v30_v29 = vld [vmem:[%s1510_s1 + $0x30] sm:$0xff] }
   0xd   :  { %745 = vmatmul.msk.f32.vlgmr.msra.gmra.mxu1 %vm147_vm1, %v24_v7  ;;  %762 = vmatmul.msk.f32.vlgmr.msra.gmra.mxu2 %vm147_vm1, %v24_v7  ;;  %v31_v30 = vld [vmem:[%s1510_s1 + $0x38] sm:$0xff]  ;;  %v32_v31 = vld [vmem:[%s1510_s1 + $0x40] sm:$0xff]  ;;  %v33_v32 = vld [vmem:[%s1510_s1 + $0x48] sm:$0xff] }
   0xe   :  { %779 = vmatmul.msk.f32.vlgmr.msra.gmra.mxu3 %vm147_vm1, %v24_v7  ;;  %120 = vperm.xlu1 %801, %v54_v12   ;;  %v34_v33 = vld [vmem:[%s1510_s1 + $0x50] sm:$0xff]  ;;  %v35_v34 = vld [vmem:[%s1510_s1 + $0x58] sm:$0xff]  ;;  %v36_v36 = vld [vmem:[%s1510_s1 + $0x60] sm:$0xff] }
   0xf   :  { %110 = vperm.xlu2 %802, %v52_v13   ;;  %v594_v37 = vld [vmem:[%s1513_s4] sm:$0x7]  ;;  %v37_v38 = vld [vmem:[%s1510_s1 + $0x68] sm:$0xff]  ;;  %v38_v42 = vld [vmem:[%s1510_s1 + $0x70] sm:$0xff] }
  0x10   :  { %v39_v46 = vld [vmem:[%s1510_s1 + $0x78] sm:$0xff] }
  0x14   :  { %105 = vperm.xlu0 %800, %v51_v14   ;;  %729 = vmatmul.msk.f32.gmra.mxu0 %vm147_vm1, %v25_v15 }
  0x15   :  { %746 = vmatmul.msk.f32.gmra.mxu1 %vm147_vm1, %v25_v15  ;;  %763 = vmatmul.msk.f32.gmra.mxu2 %vm147_vm1, %v25_v15 }
  0x16   :  { %780 = vmatmul.msk.f32.gmra.mxu3 %vm147_vm1, %v25_v15  ;;  %100 = vperm.xlu1 %801, %v50_v16  }
  0x17   :  { %95 = vperm.xlu2 %802, %v49_v17  }
  0x1c   :  { %90 = vperm.xlu0 %800, %v48_v18   ;;  %730 = vmatmul.msk.f32.gmra.mxu0 %vm147_vm1, %v26_v19 }
  0x1d   :  { %747 = vmatmul.msk.f32.gmra.mxu1 %vm147_vm1, %v26_v19  ;;  %764 = vmatmul.msk.f32.gmra.mxu2 %vm147_vm1, %v26_v19 }
  0x1e   :  { %781 = vmatmul.msk.f32.gmra.mxu3 %vm147_vm1, %v26_v19  ;;  %85 = vperm.xlu1 %801, %v47_v20  }
  0x1f   :  { %80 = vperm.xlu2 %802, %v46_v21  }
  0x24   :  { %75 = vperm.xlu0 %800, %v45_v22   ;;  %731 = vmatmul.msk.f32.gmra.mxu0 %vm147_vm1, %v27_v23 }
  0x25   :  { %748 = vmatmul.msk.f32.gmra.mxu1 %vm147_vm1, %v27_v23  ;;  %765 = vmatmul.msk.f32.gmra.mxu2 %vm147_vm1, %v27_v23 }
  0x26   :  { %782 = vmatmul.msk.f32.gmra.mxu3 %vm147_vm1, %v27_v23  ;;  %70 = vperm.xlu1 %801, %v44_v24  }
  0x27   :  { %65 = vperm.xlu2 %802, %v43_v25  }
  0x2c   :  { %60 = vperm.xlu0 %800, %v42_v26   ;;  %732 = vmatmul.msk.f32.gmra.mxu0 %vm147_vm1, %v28_v27 }
  0x2d   :  { %749 = vmatmul.msk.f32.gmra.mxu1 %vm147_vm1, %v28_v27  ;;  %766 = vmatmul.msk.f32.gmra.mxu2 %vm147_vm1, %v28_v27 }
  0x2e   :  { %783 = vmatmul.msk.f32.gmra.mxu3 %vm147_vm1, %v28_v27  ;;  %597 = vperm.xlu1 %801, %v594_v37  }
  0x34   :  { %733 = vmatmul.msk.f32.gmra.mxu0 %vm147_vm1, %v29_v28 }
  0x35   :  { %750 = vmatmul.msk.f32.gmra.mxu1 %vm147_vm1, %v29_v28  ;;  %767 = vmatmul.msk.f32.gmra.mxu2 %vm147_vm1, %v29_v28 }
  0x36   :  { %784 = vmatmul.msk.f32.gmra.mxu3 %vm147_vm1, %v29_v28 }
  0x3c   :  { %734 = vmatmul.msk.f32.gmra.mxu0 %vm147_vm1, %v30_v29 }
  0x3d   :  { %751 = vmatmul.msk.f32.gmra.mxu1 %vm147_vm1, %v30_v29  ;;  %768 = vmatmul.msk.f32.gmra.mxu2 %vm147_vm1, %v30_v29 }
  0x3e   :  { %785 = vmatmul.msk.f32.gmra.mxu3 %vm147_vm1, %v30_v29 }
  0x44   :  { %735 = vmatmul.msk.f32.gmra.mxu0 %vm147_vm1, %v31_v30 }
  0x45   :  { %752 = vmatmul.msk.f32.gmra.mxu1 %vm147_vm1, %v31_v30  ;;  %769 = vmatmul.msk.f32.gmra.mxu2 %vm147_vm1, %v31_v30 }
  0x46   :  { %786 = vmatmul.msk.f32.gmra.mxu3 %vm147_vm1, %v31_v30 }
  0x4c   :  { %736 = vmatmul.msk.f32.gmra.mxu0 %vm147_vm1, %v32_v31 }
  0x4d   :  { %753 = vmatmul.msk.f32.gmra.mxu1 %vm147_vm1, %v32_v31  ;;  %770 = vmatmul.msk.f32.gmra.mxu2 %vm147_vm1, %v32_v31 }
  0x4e   :  { %787 = vmatmul.msk.f32.gmra.mxu3 %vm147_vm1, %v32_v31 }
  0x54   :  { %737 = vmatmul.msk.f32.gmra.mxu0 %vm147_vm1, %v33_v32 }
  0x55   :  { %754 = vmatmul.msk.f32.gmra.mxu1 %vm147_vm1, %v33_v32  ;;  %771 = vmatmul.msk.f32.gmra.mxu2 %vm147_vm1, %v33_v32 }
  0x56   :  { %788 = vmatmul.msk.f32.gmra.mxu3 %vm147_vm1, %v33_v32 }
  0x5c   :  { %738 = vmatmul.msk.f32.gmra.mxu0 %vm147_vm1, %v34_v33 }
  0x5d   :  { %755 = vmatmul.msk.f32.gmra.mxu1 %vm147_vm1, %v34_v33  ;;  %772 = vmatmul.msk.f32.gmra.mxu2 %vm147_vm1, %v34_v33  ;;  %v1033_v35 = vpop.permute.xlu2 %115 }
  0x5e   :  { %789 = vmatmul.msk.f32.gmra.mxu3 %vm147_vm1, %v34_v33 }
  0x64   :  { %739 = vmatmul.msk.f32.gmra.mxu0 %vm147_vm1, %v35_v34 }
  0x65   :  { %756 = vmatmul.msk.f32.gmra.mxu1 %vm147_vm1, %v35_v34  ;;  %773 = vmatmul.msk.f32.gmra.mxu2 %vm147_vm1, %v35_v34 }
  0x66   :  { %790 = vmatmul.msk.f32.gmra.mxu3 %vm147_vm1, %v35_v34 }
  0x69   :  { %v1048_v39 = vpop.permute.xlu2 %110 }
  0x6c   :  { %740 = vmatmul.msk.f32.gmra.mxu0 %vm147_vm1, %v36_v36 }
  0x6d   :  { %757 = vmatmul.msk.f32.gmra.mxu1 %vm147_vm1, %v36_v36  ;;  %774 = vmatmul.msk.f32.gmra.mxu2 %vm147_vm1, %v36_v36 }
  0x6e   :  { %791 = vmatmul.msk.f32.gmra.mxu3 %vm147_vm1, %v36_v36 }
  0x71   :  { %v1061_v43 = vpop.permute.xlu2 %95 }
  0x74   :  { %741 = vmatmul.msk.f32.gmra.mxu0 %vm147_vm1, %v37_v38  ;;  %v1053_v40 = vpop.permute.xlu0 %135 }
  0x75   :  { %758 = vmatmul.msk.f32.gmra.mxu1 %vm147_vm1, %v37_v38  ;;  %775 = vmatmul.msk.f32.gmra.mxu2 %vm147_vm1, %v37_v38  ;;  %v1056_v41 = vpop.permute.xlu1 %125 }
  0x76   :  { %792 = vmatmul.msk.f32.gmra.mxu3 %vm147_vm1, %v37_v38 }
  0x79   :  { %v1077_v47 = vpop.permute.xlu2 %80 }
  0x7c   :  { %742 = vmatmul.msk.f32.gmra.mxu0 %vm147_vm1, %v38_v42 }
  0x7d   :  { %759 = vmatmul.msk.f32.gmra.mxu1 %vm147_vm1, %v38_v42  ;;  %776 = vmatmul.msk.f32.gmra.mxu2 %vm147_vm1, %v38_v42 }
  0x7e   :  { %793 = vmatmul.msk.f32.gmra.mxu3 %vm147_vm1, %v38_v42  ;;  %v1067_v44 = vpop.permute.xlu0 %130 }
  0x80   :  { %v1069_v45 = vpop.permute.xlu1 %120 }
  0x81   :  { %v66_v53 = vpop.permute.xlu2 %65 }
  0x84   :  { %743 = vmatmul.msk.f32.gmra.mxu0 %vm147_vm1, %v39_v46 }
  0x85   :  { %760 = vmatmul.msk.f32.gmra.mxu1 %vm147_vm1, %v39_v46  ;;  %777 = vmatmul.msk.f32.gmra.mxu2 %vm147_vm1, %v39_v46 }
  0x86   :  { %794 = vmatmul.msk.f32.gmra.mxu3 %vm147_vm1, %v39_v46  ;;  %v1080_v48 = vpop.permute.xlu0 %105 }
  0x88   :  { %v1082_v49 = vpop.permute.xlu1 %100 }
  0x89   :  { %v222_v50 = vpop.f32.mrf.mxu0 }
  0x8a   :  { %v287_v51 = vpop.f32.mrf.mxu1 }
  0x8e   :  { %v1084_v52 = vpop.permute.xlu0 %90 }
  0x90   :  { %v352_v54 = vpop.f32.mrf.mxu2  ;;  %v1086_v55 = vpop.permute.xlu1 %85 }
  0x91   :  { %v417_v56 = vpop.f32.mrf.mxu3  ;;  %v225_v57 = vpop.f32.mrf.mxu0 }
  0x92   :  { %v290_v58 = vpop.f32.mrf.mxu1  ;;  %v1088_v59 = vadd.f32 %v225_v57, %v66_v53 }
  0x93   :  { %v1090_v60 = vadd.f32 %v290_v58, %v66_v53 }
  0x94   :  { %v1529_v61 = vmax.f32 %v1088_v59, 0.0 }
  0x95   :  { %v1528_v62 = vmax.f32 %v1090_v60, 0.0 }
  0x96   :  { %v76_v63 = vpop.permute.xlu0 %75 }
  0x97   :  { %v531_v0 = vpack.c.bf16 %v1528_v62, %v1529_v61 }
  0x98   :  { %v355_v1 = vpop.f32.mrf.mxu2  ;;  %v71_v2 = vpop.permute.xlu1 %70 }
  0x99   :  { %v1098_v3 = vadd.f32 %v355_v1, %v66_v53  ;;  %v420_v4 = vpop.f32.mrf.mxu3  ;;  %v228_v5 = vpop.f32.mrf.mxu0  ;;  %563 = vst [vmem:[#allocation2 + $0x10] sm:$0xff] %v531_v0 }
  0x9a   :  { %v1100_v6 = vadd.f32 %v420_v4, %v66_v53  ;;  %v293_v7 = vpop.f32.mrf.mxu1  ;;  %v1102_v8 = vadd.f32 %v228_v5, %v71_v2 }
  0x9b   :  { %1579 = vst [vmem:[#allocation8_spill] sm:$0xff] %v1098_v3  ;;  %v1519_v9 = vmax.f32 %v1098_v3, 0.0  ;;  %v1105_v10 = vadd.f32 %v293_v7, %v71_v2 }
  0x9c   :  { %1580 = vst [vmem:[#allocation9_spill] sm:$0xff] %v1100_v6  ;;  %v1518_v11 = vmax.f32 %v1100_v6, 0.0  ;;  %v1533_v12 = vmax.f32 %v1102_v8, 0.0 }
  0x9d   :  { %v1532_v13 = vmax.f32 %v1105_v10, 0.0 }
  0x9e   :  { %v532_v14 = vpack.c.bf16 %v1518_v11, %v1519_v9  ;;  %v61_v15 = vpop.permute.xlu0 %60 }
  0x9f   :  { %v533_v16 = vpack.c.bf16 %v1532_v13, %v1533_v12  ;;  %v1118_v17 = vadd.f32 %v222_v50, %v61_v15  ;;  %v1120_v18 = vadd.f32 %v287_v51, %v61_v15  ;;  %v1122_v19 = vadd.f32 %v352_v54, %v61_v15 }
  0xa0   :  { %564 = vst [vmem:[#allocation2 + $0x18] sm:$0xff] %v532_v14  ;;  %v358_v20 = vpop.f32.mrf.mxu2  ;;  %v1124_v21 = vadd.f32 %v417_v56, %v61_v15 }
  0xa1   :  { %1581 = vst [vmem:[#allocation10_spill] sm:$0xff] %v1118_v17  ;;  %v1126_v22 = vadd.f32 %v358_v20, %v71_v2  ;;  %v423_v23 = vpop.f32.mrf.mxu3  ;;  %v231_v24 = vpop.f32.mrf.mxu0  ;;  %v1525_v25 = vmax.f32 %v1118_v17, 0.0  ;;  %v1524_v26 = vmax.f32 %v1120_v18, 0.0  ;;  %v1517_v27 = vmax.f32 %v1122_v19, 0.0 }
  0xa2   :  { %1582 = vst [vmem:[#allocation11_spill] sm:$0xff] %v1120_v18  ;;  %v1131_v28 = vadd.f32 %v423_v23, %v71_v2  ;;  %v1133_v29 = vadd.f32 %v231_v24, %v76_v63  ;;  %v296_v30 = vpop.f32.mrf.mxu1  ;;  %v1516_v31 = vmax.f32 %v1124_v21, 0.0 }
  0xa3   :  { %1583 = vst [vmem:[#allocation12_spill] sm:$0xff] %v1122_v19  ;;  %v1521_v32 = vmax.f32 %v1126_v22, 0.0  ;;  %v1137_v33 = vadd.f32 %v296_v30, %v76_v63  ;;  %v529_v34 = vpack.c.bf16 %v1524_v26, %v1525_v25 }
  0xa4   :  { %1584 = vst [vmem:[#allocation13_spill] sm:$0xff] %v1124_v21  ;;  %v1520_v36 = vmax.f32 %v1131_v28, 0.0  ;;  %v1537_v37 = vmax.f32 %v1133_v29, 0.0  ;;  %v530_v38 = vpack.c.bf16 %v1516_v31, %v1517_v27 }
  0xa5   :  { %1585 = vst [vmem:[#allocation14_spill] sm:$0xff] %v1126_v22  ;;  %v1536_v42 = vmax.f32 %v1137_v33, 0.0 }
  0xa6   :  { %565 = vst [vmem:[#allocation2 + $0x20] sm:$0xff] %v533_v16  ;;  %v534_v46 = vpack.c.bf16 %v1520_v36, %v1521_v32 }
  0xa7   :  { %1586 = vst [vmem:[#allocation15_spill] sm:$0xff] %v1131_v28  ;;  %v535_v50 = vpack.c.bf16 %v1536_v42, %v1537_v37 }
  0xa8   :  { %561 = vst [vmem:[#allocation2] sm:$0xff] %v529_v34  ;;  %v361_v51 = vpop.f32.mrf.mxu2 }
  0xa9   :  { %562 = vst [vmem:[#allocation2 + $0x8] sm:$0xff] %v530_v38  ;;  %v1158_v53 = vadd.f32 %v361_v51, %v76_v63  ;;  %v426_v54 = vpop.f32.mrf.mxu3  ;;  %v234_v56 = vpop.f32.mrf.mxu0 }
  0xaa   :  { %566 = vst [vmem:[#allocation2 + $0x28] sm:$0xff] %v534_v46  ;;  %v1160_v57 = vadd.f32 %v426_v54, %v76_v63  ;;  %v1163_v58 = vadd.f32 %v234_v56, %v1077_v47  ;;  %v299_v0 = vpop.f32.mrf.mxu1 }
  0xab   :  { %567 = vst [vmem:[#allocation2 + $0x30] sm:$0xff] %v535_v50  ;;  %v1523_v1 = vmax.f32 %v1158_v53, 0.0  ;;  %v1167_v2 = vadd.f32 %v299_v0, %v1077_v47 }
  0xac   :  { %1587 = vst [vmem:[#allocation16_spill] sm:$0xff] %v1158_v53  ;;  %v1522_v4 = vmax.f32 %v1160_v57, 0.0  ;;  %v1541_v5 = vmax.f32 %v1163_v58, 0.0 }
  0xad   :  { %1588 = vst [vmem:[#allocation17_spill] sm:$0xff] %v1160_v57  ;;  %v1540_v7 = vmax.f32 %v1167_v2, 0.0 }
  0xae   :  { %v536_v63 = vpack.c.bf16 %v1522_v4, %v1523_v1 }
  0xaf   :  { %v537_v14 = vpack.c.bf16 %v1540_v7, %v1541_v5 }
  0xb0   :  { %568 = vst [vmem:[#allocation2 + $0x38] sm:$0xff] %v536_v63  ;;  %v364_v15 = vpop.f32.mrf.mxu2 }
  0xb1   :  { %569 = vst [vmem:[#allocation2 + $0x40] sm:$0xff] %v537_v14  ;;  %v1181_v16 = vadd.f32 %v364_v15, %v1077_v47  ;;  %v429_v20 = vpop.f32.mrf.mxu3  ;;  %v237_v23 = vpop.f32.mrf.mxu0 }
  0xb2   :  { %v1184_v24 = vadd.f32 %v429_v20, %v1077_v47  ;;  %v1187_v30 = vadd.f32 %v237_v23, %v1086_v55  ;;  %v302_v34 = vpop.f32.mrf.mxu1 }
  0xb3   :  { %v1527_v38 = vmax.f32 %v1181_v16, 0.0  ;;  %v1191_v46 = vadd.f32 %v302_v34, %v1086_v55 }
  0xb4   :  { %1589 = vst [vmem:[#allocation18_spill] sm:$0xff] %v1184_v24  ;;  %v1526_v50 = vmax.f32 %v1184_v24, 0.0  ;;  %v1545_v51 = vmax.f32 %v1187_v30, 0.0 }
  0xb5   :  { %v1542_v54 = vmax.f32 %v1191_v46, 0.0 }
  0xb6   :  { %v538_v47 = vpack.c.bf16 %v1526_v50, %v1527_v38 }
  0xb7   :  { %v539_v56 = vpack.c.bf16 %v1542_v54, %v1545_v51 }
  0xb8   :  { %570 = vst [vmem:[#allocation2 + $0x48] sm:$0xff] %v538_v47  ;;  %v367_v0 = vpop.f32.mrf.mxu2 }
  0xb9   :  { %571 = vst [vmem:[#allocation2 + $0x50] sm:$0xff] %v539_v56  ;;  %v1205_v63 = vadd.f32 %v367_v0, %v1086_v55  ;;  %v432_v14 = vpop.f32.mrf.mxu3  ;;  %v240_v15 = vpop.f32.mrf.mxu0 }
  0xba   :  { %v1208_v20 = vadd.f32 %v432_v14, %v1086_v55  ;;  %v1211_v23 = vadd.f32 %v240_v15, %v1084_v52  ;;  %v305_v34 = vpop.f32.mrf.mxu1 }
  0xbb   :  { %v1531_v31 = vmax.f32 %v1205_v63, 0.0  ;;  %v1215_v27 = vadd.f32 %v305_v34, %v1084_v52 }
  0xbc   :  { %v1530_v47 = vmax.f32 %v1208_v20, 0.0  ;;  %v1547_v56 = vmax.f32 %v1211_v23, 0.0 }
  0xbd   :  { %v1546_v0 = vmax.f32 %v1215_v27, 0.0 }
  0xbe   :  { %v540_v55 = vpack.c.bf16 %v1530_v47, %v1531_v31 }
  0xbf   :  { %v541_v14 = vpack.c.bf16 %v1546_v0, %v1547_v56 }
  0xc0   :  { %572 = vst [vmem:[#allocation2 + $0x58] sm:$0xff] %v540_v55  ;;  %v370_v15 = vpop.f32.mrf.mxu2 }
  0xc1   :  { %573 = vst [vmem:[#allocation2 + $0x60] sm:$0xff] %v541_v14  ;;  %v1229_v34 = vadd.f32 %v370_v15, %v1084_v52  ;;  %v435_v11 = vpop.f32.mrf.mxu3  ;;  %v243_v9 = vpop.f32.mrf.mxu0 }
  0xc2   :  { %v1232_v36 = vadd.f32 %v435_v11, %v1084_v52  ;;  %v1235_v32 = vadd.f32 %v243_v9, %v1061_v43  ;;  %v308_v4 = vpop.f32.mrf.mxu1 }
  0xc3   :  { %v1535_v1 = vmax.f32 %v1229_v34, 0.0  ;;  %v1239_v26 = vadd.f32 %v308_v4, %v1061_v43 }
  0xc4   :  { %v1534_v55 = vmax.f32 %v1232_v36, 0.0  ;;  %v1549_v14 = vmax.f32 %v1235_v32, 0.0 }
  0xc5   :  { %v1548_v15 = vmax.f32 %v1239_v26, 0.0 }
  0xc6   :  { %v542_v52 = vpack.c.bf16 %v1534_v55, %v1535_v1 }
  0xc7   :  { %v543_v9 = vpack.c.bf16 %v1548_v15, %v1549_v14 }
  0xc8   :  { %574 = vst [vmem:[#allocation2 + $0x68] sm:$0xff] %v542_v52  ;;  %v373_v11 = vpop.f32.mrf.mxu2 }
  0xc9   :  { %575 = vst [vmem:[#allocation2 + $0x70] sm:$0xff] %v543_v9  ;;  %v1253_v4 = vadd.f32 %v373_v11, %v1061_v43  ;;  %v438_v25 = vpop.f32.mrf.mxu3  ;;  %v246_v50 = vpop.f32.mrf.mxu0 }
  0xca   :  { %v1256_v38 = vadd.f32 %v438_v25, %v1061_v43  ;;  %v1259_v62 = vadd.f32 %v246_v50, %v1082_v49  ;;  %v311_v61 = vpop.f32.mrf.mxu1 }
  0xcb   :  { %v1539_v47 = vmax.f32 %v1253_v4, 0.0  ;;  %v1263_v31 = vadd.f32 %v311_v61, %v1082_v49 }
  0xcc   :  { %v1538_v52 = vmax.f32 %v1256_v38, 0.0  ;;  %v1553_v9 = vmax.f32 %v1259_v62, 0.0 }
  0xcd   :  { %v1552_v11 = vmax.f32 %v1263_v31, 0.0 }
  0xce   :  { %v544_v43 = vpack.c.bf16 %v1538_v52, %v1539_v47 }
  0xcf   :  { %v545_v25 = vpack.c.bf16 %v1552_v11, %v1553_v9 }
  0xd0   :  { %576 = vst [vmem:[#allocation2 + $0x78] sm:$0xff] %v544_v43  ;;  %v376_v50 = vpop.f32.mrf.mxu2 }
  0xd1   :  { %577 = vst [vmem:[#allocation2 + $0x80] sm:$0xff] %v545_v25  ;;  %v1277_v61 = vadd.f32 %v376_v50, %v1082_v49  ;;  %v441_v13 = vpop.f32.mrf.mxu3  ;;  %v249_v12 = vpop.f32.mrf.mxu0 }
  0xd2   :  { %v1280_v55 = vadd.f32 %v441_v13, %v1082_v49  ;;  %v1283_v1 = vadd.f32 %v249_v12, %v1080_v48  ;;  %v314_v42 = vpop.f32.mrf.mxu1 }
  0xd3   :  { %v1544_v37 = vmax.f32 %v1277_v61, 0.0  ;;  %v1287_v52 = vadd.f32 %v314_v42, %v1080_v48 }
  0xd4   :  { %v1543_v43 = vmax.f32 %v1280_v55, 0.0  ;;  %v1555_v25 = vmax.f32 %v1283_v1, 0.0 }
  0xd5   :  { %v1554_v50 = vmax.f32 %v1287_v52, 0.0 }
  0xd6   :  { %v546_v49 = vpack.c.bf16 %v1543_v43, %v1544_v37 }
  0xd7   :  { %v547_v12 = vpack.c.bf16 %v1554_v50, %v1555_v25 }
  0xd8   :  { %578 = vst [vmem:[#allocation2 + $0x88] sm:$0xff] %v546_v49  ;;  %v379_v13 = vpop.f32.mrf.mxu2 }
  0xd9   :  { %579 = vst [vmem:[#allocation2 + $0x90] sm:$0xff] %v547_v12  ;;  %v1301_v42 = vadd.f32 %v379_v13, %v1080_v48  ;;  %v444_v47 = vpop.f32.mrf.mxu3  ;;  %v252_v7 = vpop.f32.mrf.mxu0 }
  0xda   :  { %v1304_v5 = vadd.f32 %v444_v47, %v1080_v48  ;;  %v1307_v54 = vadd.f32 %v252_v7, %v1048_v39  ;;  %v317_v43 = vpop.f32.mrf.mxu1 }
  0xdb   :  { %v1551_v37 = vmax.f32 %v1301_v42, 0.0  ;;  %v1311_v51 = vadd.f32 %v317_v43, %v1048_v39 }
  0xdc   :  { %v1550_v49 = vmax.f32 %v1304_v5, 0.0  ;;  %v1559_v12 = vmax.f32 %v1307_v54, 0.0 }
  0xdd   :  { %v1556_v13 = vmax.f32 %v1311_v51, 0.0 }
  0xde   :  { %v548_v48 = vpack.c.bf16 %v1550_v49, %v1551_v37 }
  0xdf   :  { %v549_v7 = vpack.c.bf16 %v1556_v13, %v1559_v12 }
  0xe0   :  { %580 = vst [vmem:[#allocation2 + $0x98] sm:$0xff] %v548_v48  ;;  %v382_v47 = vpop.f32.mrf.mxu2 }
  0xe1   :  { %581 = vst [vmem:[#allocation2 + $0xa0] sm:$0xff] %v549_v7  ;;  %v1325_v43 = vadd.f32 %v382_v47, %v1048_v39  ;;  %v447_v0 = vpop.f32.mrf.mxu3  ;;  %v255_v56 = vpop.f32.mrf.mxu0 }
  0xe2   :  { %v1328_v15 = vadd.f32 %v447_v0, %v1048_v39  ;;  %v1331_v14 = vadd.f32 %v255_v56, %v1033_v35  ;;  %v320_v49 = vpop.f32.mrf.mxu1 }
  0xe3   :  { %v1558_v37 = vmax.f32 %v1325_v43, 0.0  ;;  %v1335_v11 = vadd.f32 %v320_v49, %v1033_v35 }
  0xe4   :  { %v1557_v48 = vmax.f32 %v1328_v15, 0.0  ;;  %v1561_v7 = vmax.f32 %v1331_v14, 0.0 }
  0xe5   :  { %v1560_v47 = vmax.f32 %v1335_v11, 0.0 }
  0xe6   :  { %v550_v39 = vpack.c.bf16 %v1557_v48, %v1558_v37 }
  0xe7   :  { %v551_v56 = vpack.c.bf16 %v1560_v47, %v1561_v7 }
  0xe8   :  { %582 = vst [vmem:[#allocation2 + $0xa8] sm:$0xff] %v550_v39  ;;  %v385_v0 = vpop.f32.mrf.mxu2 }
  0xe9   :  { %583 = vst [vmem:[#allocation2 + $0xb0] sm:$0xff] %v551_v56  ;;  %v1349_v49 = vadd.f32 %v385_v0, %v1033_v35  ;;  %v450_v9 = vpop.f32.mrf.mxu3  ;;  %v258_v50 = vpop.f32.mrf.mxu0 }
  0xea   :  { %v1352_v25 = vadd.f32 %v450_v9, %v1033_v35  ;;  %v1355_v13 = vadd.f32 %v258_v50, %v1069_v45  ;;  %v323_v48 = vpop.f32.mrf.mxu1 }
  0xeb   :  { %v1566_v37 = vmax.f32 %v1349_v49, 0.0  ;;  %v1359_v12 = vadd.f32 %v323_v48, %v1069_v45 }
  0xec   :  { %v1565_v39 = vmax.f32 %v1352_v25, 0.0  ;;  %v1568_v56 = vmax.f32 %v1355_v13, 0.0 }
  0xed   :  { %v1567_v0 = vmax.f32 %v1359_v12, 0.0 }
  0xee   :  { %v552_v35 = vpack.c.bf16 %v1565_v39, %v1566_v37 }
  0xef   :  { %v553_v9 = vpack.c.bf16 %v1567_v0, %v1568_v56 }
  0xf0   :  { %584 = vst [vmem:[#allocation2 + $0xb8] sm:$0xff] %v552_v35  ;;  %v388_v50 = vpop.f32.mrf.mxu2 }
  0xf1   :  { %585 = vst [vmem:[#allocation2 + $0xc0] sm:$0xff] %v553_v9  ;;  %v1373_v48 = vadd.f32 %v388_v50, %v1069_v45  ;;  %v453_v47 = vpop.f32.mrf.mxu3  ;;  %v261_v7 = vpop.f32.mrf.mxu0 }
  0xf2   :  { %v1376_v21 = vadd.f32 %v453_v47, %v1069_v45  ;;  %v262_v19 = vadd.f32 %v261_v7, %v1056_v41  ;;  %v326_v6 = vpop.f32.mrf.mxu1 }
  0xf3   :  { %v1576_v39 = vmax.f32 %v1373_v48, 0.0  ;;  %v327_v37 = vadd.f32 %v326_v6, %v1056_v41 }
  0xf4   :  { %v1575_v0 = vmax.f32 %v1376_v21, 0.0  ;;  %v517_v35 = vmax.f32 %v262_v19, 0.0 }
  0xf5   :  { %v518_v56 = vmax.f32 %v327_v37, 0.0 }
  0xf6   :  { %v554_v9 = vpack.c.bf16 %v1575_v0, %v1576_v39 }
  0xf7   :  { %v555_v50 = vpack.c.bf16 %v518_v56, %v517_v35 }
  0xf8   :  { %586 = vst [vmem:[#allocation2 + $0xc8] sm:$0xff] %v554_v9  ;;  %v391_v45 = vpop.f32.mrf.mxu2 }
  0xf9   :  { %587 = vst [vmem:[#allocation2 + $0xd0] sm:$0xff] %v555_v50  ;;  %v392_v7 = vadd.f32 %v391_v45, %v1056_v41  ;;  %v456_v47 = vpop.f32.mrf.mxu3  ;;  %v264_v3 = vpop.f32.mrf.mxu0 }
  0xfa   :  { %v457_v28 = vadd.f32 %v456_v47, %v1056_v41  ;;  %v265_v6 = vadd.f32 %v264_v3, %v1067_v44  ;;  %v329_v22 = vpop.f32.mrf.mxu1 }
  0xfb   :  { %v519_v19 = vmax.f32 %v392_v7, 0.0  ;;  %v330_v37 = vadd.f32 %v329_v22, %v1067_v44 }
  0xfc   :  { %v520_v57 = vmax.f32 %v457_v28, 0.0  ;;  %v521_v53 = vmax.f32 %v265_v6, 0.0 }
  0xfd   :  { %v522_v18 = vmax.f32 %v330_v37, 0.0 }
  0xfe   :  { %v556_v0 = vpack.c.bf16 %v520_v57, %v519_v19 }
  0xff   :  { %v557_v39 = vpack.c.bf16 %v522_v18, %v521_v53 }
 0x100   :  { %588 = vst [vmem:[#allocation2 + $0xd8] sm:$0xff] %v556_v0  ;;  %v394_v9 = vpop.f32.mrf.mxu2 }
 0x101   :  { %589 = vst [vmem:[#allocation2 + $0xe0] sm:$0xff] %v557_v39  ;;  %v395_v50 = vadd.f32 %v394_v9, %v1067_v44  ;;  %v459_v45 = vpop.f32.mrf.mxu3  ;;  %v267_v17 = vpop.f32.mrf.mxu0 }
 0x102   :  { %v460_v41 = vadd.f32 %v459_v45, %v1067_v44  ;;  %v268_v3 = vadd.f32 %v267_v17, %v1053_v40  ;;  %v332_v47 = vpop.f32.mrf.mxu1 }
 0x103   :  { %v523_v7 = vmax.f32 %v395_v50, 0.0  ;;  %v333_v22 = vadd.f32 %v332_v47, %v1053_v40 }
 0x104   :  { %v524_v28 = vmax.f32 %v460_v41, 0.0  ;;  %v525_v6 = vmax.f32 %v268_v3, 0.0  ;;  %v1590_v41 = vmax.f32 %v1355_v13, 0.0  ;;  %v1591_v3 = vmax.f32 %v1359_v12, 0.0 }
 0x105   :  { %v526_v37 = vmax.f32 %v333_v22, 0.0  ;;  %v1595_v13 = vmax.f32 %v1311_v51, 0.0  ;;  %v1596_v12 = vmax.f32 %v1283_v1, 0.0  ;;  %v1601_v51 = vmax.f32 %v1263_v31, 0.0 }
 0x106   :  { %v558_v24 = vpack.c.bf16 %v524_v28, %v523_v7  ;;  %600 = vmatpush.msrb.mxu0 %v525_v6  ;;  %v1603_v1 = vmax.f32 %v1352_v25, 0.0  ;;  %v1608_v31 = vmax.f32 %v1211_v23, 0.0  ;;  %v1610_v25 = vmax.f32 %v1301_v42, 0.0 }
 0x107   :  { %v559_v0 = vpack.c.bf16 %v526_v37, %v525_v6  ;;  %620 = vmatpush.msrb.mxu1 %v526_v37  ;;  %v1615_v23 = vmax.f32 %v1280_v55, 0.0  ;;  %v1617_v42 = vmax.f32 %v1167_v2, 0.0  ;;  %v1622_v55 = vmax.f32 %v1229_v34, 0.0  ;;  %v1643_v6 = vld [vmem:[#allocation15_spill] sm:$0xff] }
 0x108   :  { %590 = vst [vmem:[#allocation2 + $0xe8] sm:$0xff] %v558_v24  ;;  %v397_v39 = vpop.f32.mrf.mxu2  ;;  %601 = vmatpush.msrb.mxu0 %v521_v53  ;;  %v1592_v53 = vmax.f32 %v1331_v14, 0.0  ;;  %v1597_v14 = vmax.f32 %v1287_v52, 0.0  ;;  %v1604_v52 = vmax.f32 %v1235_v32, 0.0  ;;  %v1611_v32 = vmax.f32 %v1304_v5, 0.0 }
 0x109   :  { %591 = vst [vmem:[#allocation2 + $0xf0] sm:$0xff] %v559_v0  ;;  %v398_v9 = vadd.f32 %v397_v39, %v1053_v40  ;;  %v462_v44 = vpop.f32.mrf.mxu3  ;;  %621 = vmatpush.msrb.mxu1 %v522_v18  ;;  %v1593_v18 = vmax.f32 %v1335_v11, 0.0  ;;  %v1598_v11 = vmax.f32 %v1373_v48, 0.0  ;;  %v1605_v48 = vmax.f32 %v1239_v26, 0.0  ;;  %v1645_v0 = vld [vmem:[#allocation8_spill] sm:$0xff] }
 0x10a   :  { %v463_v17 = vadd.f32 %v462_v44, %v1053_v40  ;;  %602 = vmatpush.msrb.mxu0 %v517_v35  ;;  %v1594_v40 = vmax.f32 %v1307_v54, 0.0  ;;  %v1600_v54 = vmax.f32 %v1259_v62, 0.0  ;;  %v1607_v62 = vmax.f32 %v1328_v15, 0.0 }
 0x10b   :  { %v527_v50 = vmax.f32 %v398_v9, 0.0  ;;  %622 = vmatpush.msrb.mxu1 %v518_v56  ;;  %v1599_v56 = vmax.f32 %v1376_v21, 0.0  ;;  %v1606_v21 = vmax.f32 %v1325_v43, 0.0  ;;  %v1612_v26 = vmax.f32 %v1187_v30, 0.0  ;;  %v1647_v9 = vld [vmem:[#allocation9_spill] sm:$0xff] }
 0x10c   :  { %v528_v45 = vmax.f32 %v463_v17, 0.0  ;;  %603 = vmatpush.msrb.mxu0 %v1590_v41  ;;  %v1613_v43 = vmax.f32 %v1191_v46, 0.0  ;;  %v1614_v15 = vmax.f32 %v1277_v61, 0.0  ;;  %v1618_v5 = vmax.f32 %v1253_v4, 0.0  ;;  %v1649_v17 = vld [vmem:[#allocation12_spill] sm:$0xff] }
 0x10d   :  { %623 = vmatpush.msrb.mxu1 %v1591_v3  ;;  %640 = vmatpush.msrb.mxu2 %v527_v50  ;;  %v1619_v30 = vmax.f32 %v1256_v38, 0.0  ;;  %v1620_v46 = vmax.f32 %v1133_v29, 0.0  ;;  %v1621_v61 = vmax.f32 %v1137_v33, 0.0  ;;  %v1624_v2 = vmax.f32 %v1102_v8, 0.0  ;;  %v593_v8 = vld [vmem:[%s1512_s3] sm:$0x7]  ;;  %v598_v3 = vpop.permute.xlu1 %597 }
 0x10e   :  { %v560_v24 = vpack.c.bf16 %v528_v45, %v527_v50  ;;  %660 = vmatpush.msrb.mxu3 %v528_v45  ;;  %604 = vmatpush.msrb.mxu0 %v1592_v53  ;;  %v1625_v4 = vmax.f32 %v1105_v10, 0.0  ;;  %v1626_v38 = vmax.f32 %v1205_v63, 0.0  ;;  %v1627_v29 = vmax.f32 %v1208_v20, 0.0  ;;  %v1631_v10 = vld [vmem:[#allocation18_spill] sm:$0xff]  ;;  %v1635_v20 = vld [vmem:[#allocation11_spill] sm:$0xff]  ;;  %v1651_v45 = vld [vmem:[#allocation13_spill] sm:$0xff] }
 0x10f   :  { %624 = vmatpush.msrb.mxu1 %v1593_v18  ;;  %641 = vmatpush.msrb.mxu2 %v523_v7  ;;  %v1628_v33 = vmax.f32 %v1088_v59, 0.0  ;;  %v1629_v34 = vmax.f32 %v1090_v60, 0.0  ;;  %v1632_v35 = vmax.f32 %v1631_v10, 0.0  ;;  %v1633_v63 = vld [vmem:[#allocation10_spill] sm:$0xff]  ;;  %v1636_v47 = vmax.f32 %v1635_v20, 0.0  ;;  %v1637_v59 = vld [vmem:[#allocation16_spill] sm:$0xff] }
 0x110   :  { %592 = vst [vmem:[#allocation2 + $0xf8] sm:$0xff] %v560_v24  ;;  %661 = vmatpush.msrb.mxu3 %v524_v28  ;;  %605 = vmatpush.msrb.mxu0 %v1594_v40  ;;  %v1638_v7 = vmax.f32 %v1637_v59, 0.0  ;;  %v1639_v60 = vld [vmem:[#allocation17_spill] sm:$0xff]  ;;  %v1644_v37 = vmax.f32 %v1643_v6, 0.0  ;;  %v1646_v39 = vmax.f32 %v1645_v0, 0.0  ;;  %v1648_v44 = vmax.f32 %v1647_v9, 0.0 }
 0x111   :  { %625 = vmatpush.msrb.mxu1 %v1595_v13  ;;  %642 = vmatpush.msrb.mxu2 %v519_v19  ;;  %v1634_v19 = vmax.f32 %v1633_v63, 0.0  ;;  %v1640_v22 = vmax.f32 %v1639_v60, 0.0  ;;  %v1650_v50 = vmax.f32 %v1649_v17, 0.0  ;;  %v1652_v41 = vmax.f32 %v1651_v45, 0.0  ;;  %s856_s3 = smov [#allocation2]  }
 0x112   :  { %662 = vmatpush.msrb.mxu3 %v520_v57  ;;  %606 = vmatpush.msrb.mxu0 %v1596_v12  ;;  %v1602_v57 = vmax.f32 %v1349_v49, 0.0  ;;  %v1609_v49 = vmax.f32 %v1215_v27, 0.0  ;;  %v1616_v27 = vmax.f32 %v1163_v58, 0.0  ;;  %v1623_v58 = vmax.f32 %v1232_v36, 0.0  ;;  %s697_s15 = sshll.u32 %s856_s3, 4  ;;  %s698_s15 = int_to_ptr.vmem [resolvable:$true] %s697_s15 }
 0x113   :  { %626 = vmatpush.msrb.mxu1 %v1597_v14  ;;  %643 = vmatpush.msrb.mxu2 %v1598_v11  ;;  %v1630_v36 = vmax.f32 %v1181_v16, 0.0  ;;  %v1641_v16 = vld [vmem:[#allocation14_spill] sm:$0xff]  ;;  %705 = dma.vmem_to_hbm [thread:$0]  %s698_s15, 4096, %s700_s18, [#allocation3], %s857_s2, %s857_s2, %s858_s19  }
 0x114   :  { %663 = vmatpush.msrb.mxu3 %v1599_v56  ;;  %607 = vmatpush.msrb.mxu0 %v1600_v54  ;;  %v1642_v28 = vmax.f32 %v1641_v16, 0.0 }
 0x115   :  { %627 = vmatpush.msrb.mxu1 %v1601_v51  ;;  %644 = vmatpush.msrb.mxu2 %v1602_v57 }
 0x116   :  { %664 = vmatpush.msrb.mxu3 %v1603_v1  ;;  %608 = vmatpush.msrb.mxu0 %v1604_v52 }
 0x117   :  { %628 = vmatpush.msrb.mxu1 %v1605_v48  ;;  %645 = vmatpush.msrb.mxu2 %v1606_v21 }
 0x118   :  { %665 = vmatpush.msrb.mxu3 %v1607_v62  ;;  %609 = vmatpush.msrb.mxu0 %v1608_v31 }
 0x119   :  { %629 = vmatpush.msrb.mxu1 %v1609_v49  ;;  %646 = vmatpush.msrb.mxu2 %v1610_v25 }
 0x11a   :  { %666 = vmatpush.msrb.mxu3 %v1611_v32  ;;  %610 = vmatpush.msrb.mxu0 %v1612_v26 }
 0x11b   :  { %630 = vmatpush.msrb.mxu1 %v1613_v43  ;;  %647 = vmatpush.msrb.mxu2 %v1614_v15 }
 0x11c   :  { %667 = vmatpush.msrb.mxu3 %v1615_v23  ;;  %611 = vmatpush.msrb.mxu0 %v1616_v27 }
 0x11d   :  { %631 = vmatpush.msrb.mxu1 %v1617_v42  ;;  %648 = vmatpush.msrb.mxu2 %v1618_v5 }
 0x11e   :  { %668 = vmatpush.msrb.mxu3 %v1619_v30  ;;  %612 = vmatpush.msrb.mxu0 %v1620_v46 }
 0x11f   :  { %632 = vmatpush.msrb.mxu1 %v1621_v61  ;;  %649 = vmatpush.msrb.mxu2 %v1622_v55 }
 0x120   :  { %669 = vmatpush.msrb.mxu3 %v1623_v58  ;;  %613 = vmatpush.msrb.mxu0 %v1624_v2 }
 0x121   :  { %633 = vmatpush.msrb.mxu1 %v1625_v4  ;;  %650 = vmatpush.msrb.mxu2 %v1626_v38 }
 0x122   :  { %670 = vmatpush.msrb.mxu3 %v1627_v29  ;;  %614 = vmatpush.msrb.mxu0 %v1628_v33 }
 0x123   :  { %634 = vmatpush.msrb.mxu1 %v1629_v34  ;;  %651 = vmatpush.msrb.mxu2 %v1630_v36 }
 0x124   :  { %671 = vmatpush.msrb.mxu3 %v1632_v35  ;;  %615 = vmatpush.msrb.mxu0 %v1634_v19 }
 0x125   :  { %635 = vmatpush.msrb.mxu1 %v1636_v47  ;;  %652 = vmatpush.msrb.mxu2 %v1638_v7 }
 0x126   :  { %672 = vmatpush.msrb.mxu3 %v1640_v22  ;;  %616 = vmatmul.f32.vlgmr.msrb.gmra.mxu0 %v593_v8 }
 0x127   :  { %636 = vmatmul.f32.vlgmr.msrb.gmra.mxu1 %v593_v8  ;;  %653 = vmatpush.msrb.mxu2 %v1642_v28 }
 0x128   :  { %673 = vmatpush.msrb.mxu3 %v1644_v37 }
 0x129   :  { %654 = vmatpush.msrb.mxu2 %v1646_v39 }
 0x12a   :  { %674 = vmatpush.msrb.mxu3 %v1648_v44 }
 0x12b   :  { %655 = vmatpush.msrb.mxu2 %v1650_v50 }
 0x12c   :  { %675 = vmatpush.msrb.mxu3 %v1652_v41  ;;  %656 = vmatmul.f32.vlgmr.msrb.gmra.mxu2 %v593_v8 }
 0x12d   :  { %676 = vmatmul.f32.vlgmr.msrb.gmra.mxu3 %v593_v8 }
 0x1a3   :  { %v617_v24 = vpop.f32.mrf.mxu0 }
 0x1a4   :  { %v637_v53 = vpop.f32.mrf.mxu1  ;;  %v618_v40 = vadd.f32 %v617_v24, %v598_v3 }
 0x1a5   :  { %v638_v18 = vadd.f32 %v637_v53, %v598_v3 }
 0x1a7   :  { %v684_v13 = vrot.slane %v638_v18, 4 }
 0x1a9   :  { %v687_v12 = vsel %vm686_vm2, %v618_v40, %v684_v13 }
 0x1aa   :  { %691 = vst [vmem:[#allocation4] sm:$0x77] %v687_v12 }
 0x1af   :  { %v657_v14 = vpop.f32.mrf.mxu2 }
 0x1b0   :  { %v677_v11 = vpop.f32.mrf.mxu3  ;;  %v658_v54 = vadd.f32 %v657_v14, %v598_v3 }
 0x1b1   :  { %v678_v56 = vadd.f32 %v677_v11, %v598_v3 }
 0x1b3   :  { %v685_v51 = vrot.slane %v678_v56, 4 }
 0x1b5   :  { %v688_v57 = vsel %vm686_vm2, %v658_v54, %v685_v51 }
 0x1b6   :  { %692 = vst [vmem:[#allocation4 + $0x8] sm:$0x77] %v688_v57 }
 0x1b7   :  { %716 = dma.vmem_to_hbm [thread:$0]  %s712_s21, 256, %s714_s23, [#allocation5]  }
 0x1b8   :  { %851 = dma.done.wait [#allocation3], 4096  }
 0x1b9   :  { %852 = vsyncadd [#allocation3], 4294963200 }
 0x1ba   :  { %853 = dma.done.wait [#allocation5], 256  }
 0x1bb   :  { %854 = vsyncadd [#allocation5], 4294967040 }
 0x1bc   :  { %725 = vsyncpa [#allocation3], 1 }
 0x1bd   :  { %726 = vsyncpa [#allocation5], 1 }

</bundles_post_ra>
